<compile_context>
chip_gen: v5e
topology: v5e:2x2
jax: 0.10.0
libtpu: 0.0.40
codegen_flags: <defaults>
</compile_context>

<pallas_src>
import functools

import jax
import jax.numpy as jnp
from jax.experimental import pallas as pl
from jax.experimental.pallas import tpu as pltpu

_LANE = 128
_BF16_SUBLANES = 16  # a bf16 vreg holds 16 sublanes


def _round_up(n, m):
    return ((n + m - 1) // m) * m


def _round_feature(d):
    # Align large feature dims to 256 (v6e/v7x MXU is 2x256x256); 128 is
    # enough (and optimal on v5e) for small dims and avoids padding blowup.
    return _round_up(d, 256) if d >= 256 else _round_up(d, _LANE)


def _vmem_cap_bytes():
    """Physical VMEM minus headroom for Mosaic scratch/semaphores."""
    try:
        phys = pltpu.get_tpu_info().vmem_capacity_bytes
    except Exception:
        phys = 64 * 1024 * 1024  # assume the smallest per-TC VMEM (v7x)
    return max(32 * 1024 * 1024, phys - 16 * 1024 * 1024)


def _mlp_kernel(x_ref, w1_ref, b1_ref, w2_ref, b2_ref, w3_ref, b3_ref, o_ref):
    # bf16 operands on the MXU, f32 accumulation; bias + ReLU in f32 on the
    # VPU, then immediately re-quantize to bf16 so live intermediates are
    # half-width (the cast is needed for the next MXU dot anyway).
    x = x_ref[...].astype(jnp.bfloat16)  # no-op if already bf16
    h = jnp.dot(x, w1_ref[...], preferred_element_type=jnp.float32)
    h = jnp.maximum(h + b1_ref[...], 0.0).astype(jnp.bfloat16)
    h = jnp.dot(h, w2_ref[...], preferred_element_type=jnp.float32)
    h = jnp.maximum(h + b2_ref[...], 0.0).astype(jnp.bfloat16)
    h = jnp.dot(h, w3_ref[...], preferred_element_type=jnp.float32)
    o_ref[...] = (h + b3_ref[...]).astype(o_ref.dtype)


@functools.partial(jax.jit, static_argnames=("out_size", "tile_m", "out_dtype"))
def _mlp_forward_padded(x, w1, b1, w2, b2, w3, b3, *, out_size, tile_m, out_dtype):
    """x: [B, in_size]; w*/b* already lane-padded + cast (see prepare_mlp_params)."""
    B, in_size = x.shape
    in_p, h1_p = w1.shape
    h2_p = w2.shape[1]
    out_p = w3.shape[1]

    # Batch: pad only to the bf16 sublane-packing multiple (16), not to a full
    # tile; partial last tiles are clipped by Pallas.
    b_p = _round_up(max(B, _BF16_SUBLANES), _BF16_SUBLANES)
    tile = max(_BF16_SUBLANES, _round_up(min(tile_m, b_p), _BF16_SUBLANES))
    grid = (pl.cdiv(b_p, tile),)

    need_pad_x = (in_p != in_size) or (b_p != B)
    if need_pad_x:
        # Single fused pad + bf16 cast pass; zero padding is exact (padded
        # lanes stay zero through the matmuls, padded rows are sliced off).
        x_in = jnp.pad(x.astype(jnp.bfloat16), ((0, b_p - B), (0, in_p - in_size)))
    else:
        x_in = x  # cast to bf16 inside the kernel -> pure DMA savings

    # Weights/biases are grid-invariant -> single-buffer them (no 2x VMEM).
    def const_spec(shape):
        return pl.BlockSpec(shape, lambda i: (0, 0), pipeline_mode=pl.Buffered(1))

    in_specs = [
        pl.BlockSpec((tile, in_p), lambda i: (i, 0)),  # x tile (double-buffered)
        const_spec((in_p, h1_p)),                       # w1
        const_spec((1, h1_p)),                          # b1
        const_spec((h1_p, h2_p)),                       # w2
        const_spec((1, h2_p)),                          # b2
        const_spec((h2_p, out_p)),                      # w3
        const_spec((1, out_p)),                         # b3
    ]
    out_spec = pl.BlockSpec((tile, out_p), lambda i: (i, 0))

    # --- VMEM budgeting -----------------------------------------------------
    x_bytes = jnp.dtype(x_in.dtype).itemsize
    out_bytes = jnp.dtype(out_dtype).itemsize
    weight_bytes = (
        (in_p * h1_p + h1_p * h2_p + h2_p * out_p) * 2   # bf16 weights
        + (h1_p + h2_p + out_p) * 4                      # f32 biases
    )
    resident_bytes = (
        2 * tile * in_p * x_bytes            # x tile, double-buffered
        + weight_bytes                       # single-buffered weights/biases
        + 2 * tile * out_p * out_bytes       # out tile, double-buffered
        + tile * (h1_p + h2_p) * 2           # live bf16 intermediates
        + tile * max(h1_p, h2_p, out_p) * 4  # f32 accumulator in flight
    )
    vmem_cap = _vmem_cap_bytes()
    if resident_bytes > vmem_cap:
        # TODO(synk): add a K-tiled weight-streaming path (grid K axis + f32
        # VMEM accumulator with pl.when init/finalize) for layers whose
        # resident weights exceed the VMEM budget (hit first on v7x, 64 MiB).
        raise ValueError(
            f"MLP weights/tiles need ~{resident_bytes>>20} MiB VMEM but only "
            f"~{vmem_cap>>20} MiB is available; reduce tile_m or add streaming."
        )
    vmem_limit = int(min(vmem_cap, max(16 * 1024 * 1024, 2 * resident_bytes)))

    cost = pl.CostEstimate(
        flops=2 * b_p * (in_p * h1_p + h1_p * h2_p + h2_p * out_p),
        transcendentals=0,
        bytes_accessed=(
            b_p * in_p * x_bytes
            + weight_bytes
            + b_p * out_p * out_bytes
        ),
    )

    out_padded = pl.pallas_call(
        _mlp_kernel,
        out_shape=jax.ShapeDtypeStruct((b_p, out_p), out_dtype),
        grid_spec=pltpu.PrefetchScalarGridSpec(
            num_scalar_prefetch=0,
            grid=grid,
            in_specs=in_specs,
            out_specs=out_spec,
        ),
        compiler_params=pltpu.CompilerParams(
            dimension_semantics=("parallel",),
            vmem_limit_bytes=vmem_limit,
        ),
        cost_estimate=cost,
    )(x_in, w1, b1, w2, b2, w3, b3)

    # Strip batch / lane padding.
    return out_padded[:B, :out_size]


def prepare_mlp_params(params):
    """One-time pad + bf16 cast of the weights (do NOT call per forward).

    Weights come in as [in_features, out_features] (transpose of PyTorch)."""
    w1, b1, w2, b2, w3, b3 = (
        params["w1"], params["b1"], params["w2"],
        params["b2"], params["w3"], params["b3"],
    )
    in_size, h1 = w1.shape
    h2 = w2.shape[1]
    out_size = w3.shape[1]

    in_p, h1_p = _round_feature(in_size), _round_feature(h1)
    h2_p, out_p = _round_feature(h2), _round_feature(out_size)

    def pad2(a, rows, cols, dtype):
        a = a.reshape(1, -1) if a.ndim == 1 else a
        return jnp.pad(a.astype(dtype),
                       ((0, rows - a.shape[0]), (0, cols - a.shape[1])))

    bf16, f32 = jnp.bfloat16, jnp.float32
    prepared = {
        "w1": pad2(w1, in_p, h1_p, bf16), "b1": pad2(b1, 1, h1_p, f32),
        "w2": pad2(w2, h1_p, h2_p, bf16), "b2": pad2(b2, 1, h2_p, f32),
        "w3": pad2(w3, h2_p, out_p, bf16), "b3": pad2(b3, 1, out_p, f32),
        "in_size": int(in_size), "out_size": int(out_size),
    }
    # Materialize now so the pad/cast cost is paid exactly once.
    return jax.tree_util.tree_map(
        lambda a: jax.block_until_ready(a) if hasattr(a, "block_until_ready") else a,
        prepared,
    )


def mlp_forward(x, prepared, tile_m=512, out_dtype=None):
    """Fused MLP forward. `prepared` comes from prepare_mlp_params (cached)."""
    out_dtype = jnp.dtype(x.dtype if out_dtype is None else out_dtype)
    # TODO(synk): for v7x tiny-B (grid=(1,)) add a feature-axis grid split so
    # both TensorCores get work, and optionally fp8 weights on v7x.
    return _mlp_forward_padded(
        x,
        prepared["w1"], prepared["b1"],
        prepared["w2"], prepared["b2"],
        prepared["w3"], prepared["b3"],
        out_size=prepared["out_size"],
        tile_m=int(tile_m),
        out_dtype=out_dtype,
    )


def init_mlp_params(key, in_size, out_size, dtype=jnp.float32):
    """Deterministic init mimicking nn.Linear default (uniform +-1/sqrt(fan_in)).

    Weights are stored [in_features, out_features] (transpose of PyTorch)."""
    h1 = in_size // 2
    h2 = in_size // 4
    keys = jax.random.split(key, 6)

    def lin(kw, kb, fan_in, fan_out):
        bound = 1.0 / jnp.sqrt(jnp.asarray(fan_in, dtype))
        w = jax.random.uniform(kw, (fan_in, fan_out), dtype, -bound, bound)
        b = jax.random.uniform(kb, (1, fan_out), dtype, -bound, bound)
        return w, b

    w1, b1 = lin(keys[0], keys[1], in_size, h1)
    w2, b2 = lin(keys[2], keys[3], h1, h2)
    w3, b3 = lin(keys[4], keys[5], h2, out_size)
    return {"w1": w1, "b1": b1, "w2": w2, "b2": b2, "w3": w3, "b3": b3}


def mlp_reference(x, p):
    h = jnp.maximum(x @ p["w1"] + p["b1"], 0.0)
    h = jnp.maximum(h @ p["w2"] + p["b2"], 0.0)
    return h @ p["w3"] + p["b3"]


if __name__ == "__main__":
    key = jax.random.PRNGKey(0)
    kx, kp = jax.random.split(key)

    B, in_size, out_size = 8, 32, 8
    x = jax.random.normal(kx, (B, in_size), jnp.float32)
    params = init_mlp_params(kp, in_size, out_size)

    # One-time weight prep (pad + bf16 cast), reused across forwards.
    prepared = prepare_mlp_params(params)

    out = mlp_forward(x, prepared)
    out = jax.block_until_ready(out)

    ref = mlp_reference(x, params)
    assert out.shape == (B, out_size)
    # bf16 MXU operands with f32 accumulation -> slightly looser tolerance vs f32 ref.
    assert jnp.allclose(out, ref, atol=2e-2, rtol=2e-2), "mismatch vs JAX reference"

    print("KERNEL_OK")
</pallas_src>

<mosaic_0001>
module attributes {stable_mosaic.version = 11 : i64} {
  func.func @_mlp_kernel(%arg0: i32, %arg1: memref<16x128xbf16, #tpu.memory_space<vmem>>, %arg2: memref<128x128xbf16, #tpu.memory_space<vmem>>, %arg3: memref<1x128xf32, #tpu.memory_space<vmem>>, %arg4: memref<128x128xbf16, #tpu.memory_space<vmem>>, %arg5: memref<1x128xf32, #tpu.memory_space<vmem>>, %arg6: memref<128x128xbf16, #tpu.memory_space<vmem>>, %arg7: memref<1x128xf32, #tpu.memory_space<vmem>>, %arg8: memref<16x128xf32, #tpu.memory_space<vmem>>) attributes {dimension_semantics = [#tpu.dimension_semantics<parallel>], iteration_bounds = array<i64: 1>, scalar_prefetch = 0 : i64, scratch_operands = 0 : i64, tpu.core_type = #tpu.core_type<tc>, window_params = [{transform_indices = @transform_0, window_bounds = array<i64: 16, 128>}, {pipeline_mode = #tpu.pipeline_mode<synchronous>, transform_indices = @transform_1, window_bounds = array<i64: 128, 128>}, {pipeline_mode = #tpu.pipeline_mode<synchronous>, transform_indices = @transform_2, window_bounds = array<i64: 1, 128>}, {pipeline_mode = #tpu.pipeline_mode<synchronous>, transform_indices = @transform_3, window_bounds = array<i64: 128, 128>}, {pipeline_mode = #tpu.pipeline_mode<synchronous>, transform_indices = @transform_4, window_bounds = array<i64: 1, 128>}, {pipeline_mode = #tpu.pipeline_mode<synchronous>, transform_indices = @transform_5, window_bounds = array<i64: 128, 128>}, {pipeline_mode = #tpu.pipeline_mode<synchronous>, transform_indices = @transform_6, window_bounds = array<i64: 1, 128>}, {transform_indices = @transform_7, window_bounds = array<i64: 16, 128>}]} {
    %c0 = arith.constant 0 : index
    %c0_0 = arith.constant 0 : index
    %0 = vector.load %arg1[%c0, %c0_0] : memref<16x128xbf16, #tpu.memory_space<vmem>>, vector<16x128xbf16>
    %c0_1 = arith.constant 0 : index
    %c0_2 = arith.constant 0 : index
    %1 = vector.load %arg2[%c0_1, %c0_2] : memref<128x128xbf16, #tpu.memory_space<vmem>>, vector<128x128xbf16>
    %cst = arith.constant dense<0.000000e+00> : vector<16x128xf32>
    %2 = tpu.matmul %0, %1, %cst {dimension_numbers = #tpu.dot_dimension_numbers<[1], [0], [0], [1], [0, 0, 1, 1], [], []>} : vector<16x128xbf16>, vector<128x128xbf16>, vector<16x128xf32> -> vector<16x128xf32>
    %c0_3 = arith.constant 0 : index
    %c0_4 = arith.constant 0 : index
    %3 = vector.load %arg3[%c0_3, %c0_4] : memref<1x128xf32, #tpu.memory_space<vmem>>, vector<1x128xf32>
    %4 = vector.broadcast %3 : vector<1x128xf32> to vector<16x128xf32>
    %5 = arith.addf %2, %4 : vector<16x128xf32>
    %cst_5 = arith.constant 0.000000e+00 : f32
    %6 = vector.broadcast %cst_5 : f32 to vector<16x128xf32>
    %7 = arith.maximumf %5, %6 : vector<16x128xf32>
    %8 = arith.truncf %7 : vector<16x128xf32> to vector<16x128xbf16>
    %c0_6 = arith.constant 0 : index
    %c0_7 = arith.constant 0 : index
    %9 = vector.load %arg4[%c0_6, %c0_7] : memref<128x128xbf16, #tpu.memory_space<vmem>>, vector<128x128xbf16>
    %cst_8 = arith.constant dense<0.000000e+00> : vector<16x128xf32>
    %10 = tpu.matmul %8, %9, %cst_8 {dimension_numbers = #tpu.dot_dimension_numbers<[1], [0], [0], [1], [0, 0, 1, 1], [], []>} : vector<16x128xbf16>, vector<128x128xbf16>, vector<16x128xf32> -> vector<16x128xf32>
    %c0_9 = arith.constant 0 : index
    %c0_10 = arith.constant 0 : index
    %11 = vector.load %arg5[%c0_9, %c0_10] : memref<1x128xf32, #tpu.memory_space<vmem>>, vector<1x128xf32>
    %12 = vector.broadcast %11 : vector<1x128xf32> to vector<16x128xf32>
    %13 = arith.addf %10, %12 : vector<16x128xf32>
    %cst_11 = arith.constant 0.000000e+00 : f32
    %14 = vector.broadcast %cst_11 : f32 to vector<16x128xf32>
    %15 = arith.maximumf %13, %14 : vector<16x128xf32>
    %16 = arith.truncf %15 : vector<16x128xf32> to vector<16x128xbf16>
    %c0_12 = arith.constant 0 : index
    %c0_13 = arith.constant 0 : index
    %17 = vector.load %arg6[%c0_12, %c0_13] : memref<128x128xbf16, #tpu.memory_space<vmem>>, vector<128x128xbf16>
    %cst_14 = arith.constant dense<0.000000e+00> : vector<16x128xf32>
    %18 = tpu.matmul %16, %17, %cst_14 {dimension_numbers = #tpu.dot_dimension_numbers<[1], [0], [0], [1], [0, 0, 1, 1], [], []>} : vector<16x128xbf16>, vector<128x128xbf16>, vector<16x128xf32> -> vector<16x128xf32>
    %c0_15 = arith.constant 0 : index
    %c0_16 = arith.constant 0 : index
    %19 = vector.load %arg7[%c0_15, %c0_16] : memref<1x128xf32, #tpu.memory_space<vmem>>, vector<1x128xf32>
    %20 = vector.broadcast %19 : vector<1x128xf32> to vector<16x128xf32>
    %21 = arith.addf %18, %20 : vector<16x128xf32>
    %c0_17 = arith.constant 0 : index
    %c0_18 = arith.constant 0 : index
    %22 = vector.load %arg8[%c0_17, %c0_18] : memref<16x128xf32, #tpu.memory_space<vmem>>, vector<16x128xf32>
    tpu.vector_store %arg8[%c0_17, %c0_18], %21 {strides = array<i32>} : memref<16x128xf32, #tpu.memory_space<vmem>>, vector<16x128xf32>,
    return
  }
  func.func @transform_0(%arg0: i32) -> (i32, i32) {
    %c0_i32 = arith.constant 0 : i32
    %c0_i32_0 = arith.constant 0 : i32
    return %arg0, %c0_i32 : i32, i32
  }
  func.func @transform_1(%arg0: i32) -> (i32, i32) {
    %c0_i32 = arith.constant 0 : i32
    %c0_i32_0 = arith.constant 0 : i32
    %c0_i32_1 = arith.constant 0 : i32
    return %c0_i32, %c0_i32_0 : i32, i32
  }
  func.func @transform_2(%arg0: i32) -> (i32, i32) {
    %c0_i32 = arith.constant 0 : i32
    %c0_i32_0 = arith.constant 0 : i32
    %c0_i32_1 = arith.constant 0 : i32
    return %c0_i32, %c0_i32_0 : i32, i32
  }
  func.func @transform_3(%arg0: i32) -> (i32, i32) {
    %c0_i32 = arith.constant 0 : i32
    %c0_i32_0 = arith.constant 0 : i32
    %c0_i32_1 = arith.constant 0 : i32
    return %c0_i32, %c0_i32_0 : i32, i32
  }
  func.func @transform_4(%arg0: i32) -> (i32, i32) {
    %c0_i32 = arith.constant 0 : i32
    %c0_i32_0 = arith.constant 0 : i32
    %c0_i32_1 = arith.constant 0 : i32
    return %c0_i32, %c0_i32_0 : i32, i32
  }
  func.func @transform_5(%arg0: i32) -> (i32, i32) {
    %c0_i32 = arith.constant 0 : i32
    %c0_i32_0 = arith.constant 0 : i32
    %c0_i32_1 = arith.constant 0 : i32
    return %c0_i32, %c0_i32_0 : i32, i32
  }
  func.func @transform_6(%arg0: i32) -> (i32, i32) {
    %c0_i32 = arith.constant 0 : i32
    %c0_i32_0 = arith.constant 0 : i32
    %c0_i32_1 = arith.constant 0 : i32
    return %c0_i32, %c0_i32_0 : i32, i32
  }
  func.func @transform_7(%arg0: i32) -> (i32, i32) {
    %c0_i32 = arith.constant 0 : i32
    %c0_i32_0 = arith.constant 0 : i32
    return %arg0, %c0_i32 : i32, i32
  }
}

</mosaic_0001>

<bundles_post_ra>
// kernel: _mlp_forward_padded.1
= control target key start
LH: loop header
LB: loop body
LE: loop exit
PB: predicated region body
PF: predicated region fallthrough
CT: control target
= control target key end

     0   :  { %12 = vsyncpa [#allocation3], 0  ;;  %s622_s0 = inlined_call_operand.vmem [shape: bf16[16,128], index: 0, kind: input, shape index: {}]   ;;  %s623_s1 = inlined_call_operand.hbm [shape: bf16[128,128], index: 1, kind: input, shape index: {}]   ;;  %s624_s2 = inlined_call_operand.vmem [shape: f32[1,128], index: 2, kind: input, shape index: {}]   ;;  %s625_s3 = inlined_call_operand.hbm [shape: bf16[128,128], index: 3, kind: input, shape index: {}]   ;;  %s626_s4 = inlined_call_operand.vmem [shape: f32[1,128], index: 4, kind: input, shape index: {}]   ;;  %s627_s5 = inlined_call_operand.hbm [shape: bf16[128,128], index: 5, kind: input, shape index: {}]   ;;  %s628_s6 = inlined_call_operand.vmem [shape: f32[1,128], index: 6, kind: input, shape index: {}]   ;;  %s629_s7 = inlined_call_operand.vmem [shape: f32[16,128], index: 7, kind: output, shape index: {}]  }
   0x1   :  { %13 = vsyncpa [#allocation5], 0  ;;  %s35_s26 = sshll.u32 %s625_s3, 4  ;;  %s550_s27 = smov [#allocation4]   ;;  %s36_s26 = int_to_ptr.hbm [resolvable:$true] %s35_s26 }
   0x2   :  { %s37_s28 = sshll.u32 %s550_s27, 4  ;;  %s20_s8 = sshll.u32 %s623_s1, 4  ;;  %s38_s28 = int_to_ptr.vmem [resolvable:$true] %s37_s28  ;;  %s21_s8 = int_to_ptr.hbm [resolvable:$true] %s20_s8 }
   0x3   :  { %s551_s9 = smov 64   ;;  %s552_s10 = smov 4  }
   0x4   :  { %43 = dma.hbm_to_vmem [thread:$0]  %s36_s26, 1024, %s38_s28, [#allocation5], %s551_s9, %s551_s9, %s552_s10  }
   0x5   :  { %s553_s11 = smov [#allocation2]   ;;  %s50_s15 = sshll.u32 %s627_s5, 4  ;;  %s51_s15 = int_to_ptr.hbm [resolvable:$true] %s50_s15 }
   0x6   :  { %s22_s12 = sshll.u32 %s553_s11, 4  ;;  %s554_s3 = smov [#allocation6]   ;;  %s23_s12 = int_to_ptr.vmem [resolvable:$true] %s22_s12 }
   0x7   :  { %28 = dma.hbm_to_vmem [thread:$0]  %s21_s8, 1024, %s23_s12, [#allocation3], %s551_s9, %s551_s9, %s552_s10  }
   0x8   :  { %s52_s16 = sshll.u32 %s554_s3, 4  ;;  %s53_s16 = int_to_ptr.vmem [resolvable:$true] %s52_s16 }
   0x9   :  { %58 = dma.hbm_to_vmem [thread:$0]  %s51_s15, 1024, %s53_s16, [#allocation5], %s551_s9, %s551_s9, %s552_s10  }
   0xa   :  { %546 = dma.done.wait [#allocation3], 1024  }
   0xb   :  { %547 = vsyncadd [#allocation3], 4294966272 }
   0xc   :  { %548 = dma.done.wait [#allocation5], 2048  }
   0xd   :  { %549 = vsyncadd [#allocation5], 4294965248  ;;  %v449_v0 = vld [vmem:[#allocation2 + $0x38] sm:$0xff]  ;;  %v448_v1 = vld [vmem:[#allocation2 + $0x30] sm:$0xff] }
   0xe   :  { %149 = vmatpush.bf16.msra.mxu0 %v449_v0  ;;  %v457_v2 = vld [vmem:[#allocation4 + $0x38] sm:$0xff]  ;;  %v456_v3 = vld [vmem:[#allocation4 + $0x30] sm:$0xff]  ;;  %v447_v4 = vld [vmem:[#allocation2 + $0x28] sm:$0xff] }
   0xf   :  { %234 = vmatpush.bf16.msra.mxu1 %v457_v2  ;;  %v455_v5 = vld [vmem:[#allocation4 + $0x28] sm:$0xff]  ;;  %v446_v6 = vld [vmem:[#allocation2 + $0x20] sm:$0xff]  ;;  %v445_v8 = vld [vmem:[#allocation2 + $0x18] sm:$0xff] }
  0x10   :  { %v454_v7 = vld [vmem:[#allocation4 + $0x20] sm:$0xff]  ;;  %v444_v9 = vld [vmem:[#allocation2 + $0x10] sm:$0xff]  ;;  %v443_v10 = vld [vmem:[#allocation2 + $0x8] sm:$0xff] }
  0x11   :  { %v442_v11 = vld [vmem:[#allocation2] sm:$0xff]  ;;  %v453_v13 = vld [vmem:[#allocation4 + $0x18] sm:$0xff]  ;;  %v452_v14 = vld [vmem:[#allocation4 + $0x10] sm:$0xff] }
  0x12   :  { %150 = vmatpush.bf16.msra.mxu0 %v448_v1  ;;  %v441_v12 = vld [vmem:[%s622_s0] sm:$0xff]  ;;  %v451_v15 = vld [vmem:[#allocation4 + $0x8] sm:$0xff]  ;;  %v465_v17 = vld [vmem:[#allocation6 + $0x38] sm:$0xff] }
  0x13   :  { %235 = vmatpush.bf16.msra.mxu1 %v456_v3  ;;  %v450_v16 = vld [vmem:[#allocation4] sm:$0xff]  ;;  %319 = vmatpush.bf16.msra.mxu2 %v465_v17  ;;  %v464_v18 = vld [vmem:[#allocation6 + $0x30] sm:$0xff]  ;;  %v463_v19 = vld [vmem:[#allocation6 + $0x28] sm:$0xff] }
  0x14   :  { %v462_v20 = vld [vmem:[#allocation6 + $0x20] sm:$0xff]  ;;  %v461_v29 = vld [vmem:[#allocation6 + $0x18] sm:$0xff]  ;;  %v460_v30 = vld [vmem:[#allocation6 + $0x10] sm:$0xff] }
  0x15   :  { %v471_v22 = vld [vmem:[%s624_s2] ss:$0 sm:$0xff]  ;;  %v459_v31 = vld [vmem:[#allocation6 + $0x8] sm:$0xff] }
  0x16   :  { %151 = vmatpush.bf16.msra.mxu0 %v447_v4  ;;  %v458_v32 = vld [vmem:[#allocation6] sm:$0xff] }
  0x17   :  { %236 = vmatpush.bf16.msra.mxu1 %v455_v5  ;;  %320 = vmatpush.bf16.msra.mxu2 %v464_v18  ;;  %v472_v34 = vld [vmem:[%s626_s4] ss:$0 sm:$0xff] }
  0x18   :  { %v473_v41 = vld [vmem:[%s628_s6] ss:$0 sm:$0xff] }
  0x1a   :  { %152 = vmatpush.bf16.msra.mxu0 %v446_v6 }
  0x1b   :  { %237 = vmatpush.bf16.msra.mxu1 %v454_v7  ;;  %321 = vmatpush.bf16.msra.mxu2 %v463_v19 }
  0x1e   :  { %153 = vmatpush.bf16.msra.mxu0 %v445_v8 }
  0x1f   :  { %238 = vmatpush.bf16.msra.mxu1 %v453_v13  ;;  %322 = vmatpush.bf16.msra.mxu2 %v462_v20 }
  0x22   :  { %154 = vmatpush.bf16.msra.mxu0 %v444_v9 }
  0x23   :  { %239 = vmatpush.bf16.msra.mxu1 %v452_v14  ;;  %323 = vmatpush.bf16.msra.mxu2 %v461_v29 }
  0x26   :  { %155 = vmatpush.bf16.msra.mxu0 %v443_v10 }
  0x27   :  { %240 = vmatpush.bf16.msra.mxu1 %v451_v15  ;;  %324 = vmatpush.bf16.msra.mxu2 %v460_v30 }
  0x2a   :  { %156 = vmatpush.bf16.msra.mxu0 %v442_v11 }
  0x2b   :  { %241 = vmatpush.bf16.msra.mxu1 %v450_v16  ;;  %325 = vmatpush.bf16.msra.mxu2 %v459_v31 }
  0x2d   :  { %157 = vmatmul.bf16.vlgmr.msra.gmra.mxu0 %v441_v12 }
  0x2f   :  { %326 = vmatpush.bf16.msra.mxu2 %v458_v32 }
  0xaa   :  { %v158_v21 = vpop.f32.mrf.mxu0 }
  0xab   :  { %v159_v23 = vadd.f32 %v471_v22, %v158_v21 }
  0xad   :  { %v163_v26 = vmax.f32 %v159_v23, 0.0 }
  0xb2   :  { %v160_v24 = vpop.f32.mrf.mxu0 }
  0xb3   :  { %v161_v25 = vadd.f32 %v471_v22, %v160_v24 }
  0xb5   :  { %v164_v27 = vmax.f32 %v161_v25, 0.0 }
  0xb7   :  { %v165_v28 = vpack.c.bf16 %v164_v27, %v163_v26 }
  0xb9   :  { %242 = vmatmul.bf16.vlgmr.msra.gmra.mxu1 %v165_v28 }
 0x136   :  { %v243_v33 = vpop.f32.mrf.mxu1 }
 0x137   :  { %v244_v35 = vadd.f32 %v472_v34, %v243_v33 }
 0x139   :  { %v248_v38 = vmax.f32 %v244_v35, 0.0 }
 0x13e   :  { %v245_v36 = vpop.f32.mrf.mxu1 }
 0x13f   :  { %v246_v37 = vadd.f32 %v472_v34, %v245_v36 }
 0x141   :  { %v249_v39 = vmax.f32 %v246_v37, 0.0 }
 0x143   :  { %v250_v40 = vpack.c.bf16 %v249_v39, %v248_v38 }
 0x145   :  { %327 = vmatmul.bf16.vlgmr.msra.gmra.mxu2 %v250_v40 }
 0x1c8   :  { %v328_v42 = vpop.f32.mrf.mxu2 }
 0x1c9   :  { %v329_v43 = vadd.f32 %v473_v41, %v328_v42 }
 0x1cb   :  { %333 = vst [vmem:[%s629_s7] sm:$0xff] %v329_v43 }
 0x1d0   :  { %v330_v44 = vpop.f32.mrf.mxu2 }
 0x1d1   :  { %v331_v45 = vadd.f32 %v473_v41, %v330_v44 }
 0x1d3   :  { %334 = vst [vmem:[%s629_s7 + $0x8] sm:$0xff] %v331_v45 }
 0x1d4   :  { %339 = vsyncpa [#allocation3], 1 }
 0x1d5   :  { %340 = vsyncpa [#allocation5], 1 }

</bundles_post_ra>
